<compile_context>
chip_gen: v7x
topology: tpu7x:2x2x1
jax: 0.10.0
libtpu: 0.0.40
codegen_flags: <defaults>
</compile_context>

<pallas_src>
import functools
import math

import jax
import jax.numpy as jnp
from jax.experimental import pallas as pl
from jax.experimental.pallas import tpu as pltpu


# ----------------------------------------------------------------------------
# helpers
# ----------------------------------------------------------------------------
def _pick_tile(dim, target, multiple):
    """Largest multiple of `multiple` that exactly divides `dim` and is <= target.

    Falls back to the full dim (full-extent blocks always satisfy the (8, 128)
    BlockSpec divisibility rule), so no masked partial stores / illegal blocks.
    """
    t = min(dim, target)
    t -= t % multiple
    while t >= multiple:
        if dim % t == 0:
            return t
        t -= multiple
    return dim


def _vmem_capacity_bytes():
    """Physical VMEM of the local chip; conservative v7x fallback (64 MiB)."""
    try:
        return int(pltpu.get_tpu_info().vmem_capacity_bytes)
    except Exception:  # interpret mode / older API
        return 64 << 20


# ----------------------------------------------------------------------------
# Pallas kernels
# ----------------------------------------------------------------------------
def _linear_kernel(x_ref, w_ref, b_ref, o_ref, acc_ref):
    """One (tm, tn) output tile of  o = x @ w.T + b, accumulated over K tiles.

    x_ref: (tm, tk) bf16, w_ref: (tn, tk) bf16, b_ref: (1, tn) f32,
    acc_ref: (tm, tn) f32 scratch, o_ref: (tm, tn) out dtype.
    """
    k = pl.program_id(2)

    @pl.when(k == 0)
    def _init():
        acc_ref[...] = jnp.zeros_like(acc_ref)

    # Contract x's last dim with w's last dim (== x @ w.T).  This is the
    # MXU-native transposed-RHS layout; no host transpose, no in-kernel
    # relayout (check pl.lower_as_mlir if in doubt).
    acc_ref[...] += jax.lax.dot_general(
        x_ref[...], w_ref[...],
        dimension_numbers=(((1,), (1,)), ((), ())),
        preferred_element_type=jnp.float32,
    )

    @pl.when(k == pl.num_programs(2) - 1)
    def _finalize():
        o_ref[...] = (acc_ref[...] + b_ref[...]).astype(o_ref.dtype)


def _attn_kernel(q_ref, k_ref, v_ref, o_ref, *rest, num_heads, head_dim,
                 masked, scale, need_weights):
    """All heads of one (batch, query-tile) step.

    q_ref:  (tq, D) bf16   k_ref / v_ref: (L, D) bf16
    o_ref:  (tq, D) bf16   w_ref (optional output): (tq, L) f32
    ctx_ref (scratch): (tq, D) f32
    """
    if need_weights:
        w_ref, ctx_ref = rest
    else:
        (ctx_ref,) = rest

    tq = q_ref.shape[0]
    L = k_ref.shape[0]

    if masked:
        q_start = pl.program_id(1) * tq
        row = q_start + jax.lax.broadcasted_iota(jnp.int32, (tq, L), 0)
        col = jax.lax.broadcasted_iota(jnp.int32, (tq, L), 1)
        above_diag = col > row                      # torch.triu(diag=1)
        # TODO(synk): skip fully-masked KV column chunks (halves MXU/exp work
        # for the causal path) instead of masking the full (tq, L) score tile.

    for h in range(num_heads):
        lo = h * head_dim
        hi = lo + head_dim

        # Per-head operands sliced straight from the Refs (no (L, D)-sized
        # live values); softmax scale folded into the small (tq, Dh) Q slice.
        q_h = q_ref[:, lo:hi] * scale                         # bf16 (tq, Dh)

        # q @ k.T via dot_general contracting last dims (MXU, no relayout).
        s = jax.lax.dot_general(
            q_h, k_ref[:, lo:hi],
            dimension_numbers=(((1,), (1,)), ((), ())),
            preferred_element_type=jnp.float32,
        )                                                     # (tq, L) f32

        if masked:
            s = jnp.where(above_diag, jnp.float32(-jnp.inf), s)

        # Softmax in f32; exact reciprocal because these probabilities are the
        # user-visible attention weights (rows must sum to 1 like PyTorch).
        m = jnp.max(s, axis=-1, keepdims=True)
        e = jnp.exp(s - m)
        denom = jnp.sum(e, axis=-1, keepdims=True)
        p = e * pl.reciprocal(denom)                          # (tq, L) f32

        if need_weights:
            # Accumulate the head average directly into the resident output
            # block -> no (tq, L) live accumulator to spill.
            if h == 0:
                w_ref[...] = p
            else:
                w_ref[...] += p

        # Per-head context into its column slab of the f32 scratch.
        ctx_ref[:, lo:hi] = jnp.dot(p.astype(jnp.bfloat16), v_ref[:, lo:hi],
                                    preferred_element_type=jnp.float32)

    if need_weights:
        w_ref[...] *= jnp.float32(1.0 / num_heads)
    # Single lane-dense bf16 store of the whole (tq, D) context tile.
    o_ref[...] = ctx_ref[...].astype(o_ref.dtype)


# ----------------------------------------------------------------------------
# Pallas wrappers
# ----------------------------------------------------------------------------
def _linear(x, w, b, out_dtype=jnp.float32):
    """out = x @ w.T + b.   x: (M, K), w: (N, K), b: (N,) -> (M, N)."""
    M, K = x.shape
    N = w.shape[0]
    x = x.astype(jnp.bfloat16)
    w = w.astype(jnp.bfloat16)
    b2 = b.astype(jnp.float32).reshape(1, N)

    # Larger tiles than before (per-step VMEM ~3 MiB): fewer re-reads of the x
    # tile across the j axis and amortized per-grid-step overhead.
    tm = _pick_tile(M, 256, 8)
    tn = _pick_tile(N, 512, 128)
    tk = _pick_tile(K, 512, 128)
    grid = (M // tm, N // tn, K // tk)

    return pl.pallas_call(
        _linear_kernel,
        out_shape=jax.ShapeDtypeStruct((M, N), out_dtype),
        grid=grid,
        in_specs=[
            pl.BlockSpec((tm, tk), lambda i, j, k: (i, k)),
            pl.BlockSpec((tn, tk), lambda i, j, k: (j, k)),
            pl.BlockSpec((1, tn), lambda i, j, k: (0, j)),
        ],
        out_specs=pl.BlockSpec((tm, tn), lambda i, j, k: (i, j)),
        scratch_shapes=[pltpu.VMEM((tm, tn), jnp.float32)],
        compiler_params=pltpu.CompilerParams(
            dimension_semantics=("parallel", "parallel", "arbitrary")),
    )(x, w, b2)


def _attention(q, k, v, num_heads, masked, need_weights):
    """q/k/v: (B, L, D) bf16 -> (context (B, L, D) bf16, avg weights (B, L, L) f32 | None)."""
    B, L, d_model = q.shape
    head_dim = d_model // num_heads
    scale = 1.0 / math.sqrt(head_dim)

    cap = _vmem_capacity_bytes()
    kv_bytes = 2 * 2 * L * d_model * 2          # K + V full-row blocks, double-buffered bf16

    def step_bytes(tq):
        return (kv_bytes
                + 2 * 2 * tq * d_model * 2                      # Q in + ctx out blocks (2-buf bf16)
                + ((2 * tq * L * 4) if need_weights else 0)     # (tq, L) f32 weights block (2-buf)
                + tq * d_model * 4)                             # f32 context scratch

    # Largest MXU-friendly query tile whose footprint leaves ~half of VMEM as
    # headroom: v6e/v5e (128 MiB) keep tq up to 256, v7x (64 MiB) steps down.
    tq = _pick_tile(L, 8, 8)
    for target in (256, 128, 64, 32, 16, 8):
        cand = _pick_tile(L, target, 8)
        if cand <= target and step_bytes(cand) <= cap // 2:
            tq = cand
            break

    # Explicit scoped-VMEM budget: raises v5e's 16 MiB default, stays below
    # physical capacity everywhere.
    vmem_limit = int(min(max(step_bytes(tq) * 5 // 4, 32 << 20), cap - (8 << 20)))

    grid = (B, L // tq)

    kernel = functools.partial(
        _attn_kernel, num_heads=num_heads, head_dim=head_dim,
        masked=masked, scale=scale, need_weights=need_weights)

    q_spec = pl.BlockSpec((None, tq, d_model), lambda b, qi: (b, qi, 0))
    kv_spec = pl.BlockSpec((None, L, d_model), lambda b, qi: (b, 0, 0))
    o_spec = pl.BlockSpec((None, tq, d_model), lambda b, qi: (b, qi, 0))
    w_spec = pl.BlockSpec((None, tq, L), lambda b, qi: (b, qi, 0))

    out_shape = [jax.ShapeDtypeStruct((B, L, d_model), jnp.bfloat16)]
    out_specs = [o_spec]
    if need_weights:
        out_shape.append(jax.ShapeDtypeStruct((B, L, L), jnp.float32))
        out_specs.append(w_spec)

    outs = pl.pallas_call(
        kernel,
        out_shape=tuple(out_shape),
        grid=grid,
        in_specs=[q_spec, kv_spec, kv_spec],
        out_specs=tuple(out_specs),
        scratch_shapes=[pltpu.VMEM((tq, d_model), jnp.float32)],
        compiler_params=pltpu.CompilerParams(
            dimension_semantics=("parallel", "parallel"),
            vmem_limit_bytes=vmem_limit),
    )(q, k, v)

    if need_weights:
        ctx, w = outs
        return ctx, w
    (ctx,) = outs
    return ctx, None


def multihead_attention(x, params, num_heads, masked=False, need_weights=True):
    """Matches nn.MultiheadAttention(d_model, num_heads, batch_first=True)(x,x,x)."""
    B, L, D = x.shape
    in_w, in_b, out_w, out_b = params  # (3D, D), (3D,), (D, D), (D,)
    x2d = x.reshape(B * L, D)

    # Three separate Q/K/V projections (weight-slab rows of in_proj): each
    # produced array feeds the attention kernel with zero dead columns and a
    # full-last-dim BlockSpec (legal for any d_model).
    q = _linear(x2d, in_w[:D], in_b[:D], out_dtype=jnp.bfloat16).reshape(B, L, D)
    k = _linear(x2d, in_w[D:2 * D], in_b[D:2 * D], out_dtype=jnp.bfloat16).reshape(B, L, D)
    v = _linear(x2d, in_w[2 * D:], in_b[2 * D:], out_dtype=jnp.bfloat16).reshape(B, L, D)

    ctx, attn_weights = _attention(q, k, v, num_heads, masked, need_weights)

    out = _linear(ctx.reshape(B * L, D), out_w, out_b,
                  out_dtype=jnp.float32).reshape(B, L, D)
    return out, attn_weights


# ----------------------------------------------------------------------------
# Pure-JAX reference (for correctness check)
# ----------------------------------------------------------------------------
def _reference(x, params, num_heads, masked=False):
    B, L, D = x.shape
    Dh = D // num_heads
    in_w, in_b, out_w, out_b = params
    qkv = x.reshape(B * L, D) @ in_w.T + in_b
    q, k, v = jnp.split(qkv, 3, axis=-1)

    def to_heads(t):
        return t.reshape(B, L, num_heads, Dh).transpose(0, 2, 1, 3)

    q, k, v = map(to_heads, (q, k, v))
    s = jnp.einsum("bhqd,bhkd->bhqk", q, k) / math.sqrt(Dh)
    if masked:
        row = jax.lax.broadcasted_iota(jnp.int32, (L, L), 0)
        col = jax.lax.broadcasted_iota(jnp.int32, (L, L), 1)
        s = jnp.where(col > row, -jnp.inf, s)
    p = jax.nn.softmax(s, axis=-1)
    ctx = jnp.einsum("bhqk,bhkd->bhqd", p, v)
    ctx = ctx.transpose(0, 2, 1, 3).reshape(B * L, D)
    out = (ctx @ out_w.T + out_b).reshape(B, L, D)
    return out, jnp.mean(p, axis=1)


# ----------------------------------------------------------------------------
if __name__ == "__main__":
    B, L, D, H = 2, 8, 32, 4  # batch, seq, d_model, num_heads

    key = jax.random.PRNGKey(0)
    kx, k1, k2, k3, k4 = jax.random.split(key, 5)
    x = jax.random.normal(kx, (B, L, D), jnp.float32)

    # Deterministic synthetic parameters (nn.MultiheadAttention shapes).
    in_proj_w = jax.random.normal(k1, (3 * D, D), jnp.float32) * 0.1
    in_proj_b = jax.random.normal(k2, (3 * D,), jnp.float32) * 0.1
    out_proj_w = jax.random.normal(k3, (D, D), jnp.float32) * 0.1
    out_proj_b = jax.random.normal(k4, (D,), jnp.float32) * 0.1
    params = (in_proj_w, in_proj_b, out_proj_w, out_proj_b)

    for masked in (False, True):
        out, w = multihead_attention(x, params, H, masked=masked)
        jax.block_until_ready((out, w))
        ref_out, ref_w = _reference(x, params, H, masked=masked)
        assert out.shape == (B, L, D) and w.shape == (B, L, L)
        # Tolerances account for bf16 MXU inputs (f32 accumulation, exact
        # softmax reciprocal keep errors small).
        assert jnp.allclose(out, ref_out, atol=5e-2), "output mismatch"
        assert jnp.allclose(w, ref_w, atol=2e-2), "attn weights mismatch"

    print("KERNEL_OK")
</pallas_src>

<mosaic_0001>
module attributes {stable_mosaic.version = 11 : i64} {
  func.func @_linear_kernel(%arg0: i32, %arg1: i32, %arg2: i32, %arg3: memref<16x32xbf16, #tpu.memory_space<vmem>>, %arg4: memref<32x32xbf16, #tpu.memory_space<vmem>>, %arg5: memref<1x32xf32, #tpu.memory_space<vmem>>, %arg6: memref<16x32xbf16, #tpu.memory_space<vmem>>, %arg7: memref<16x32xf32, #tpu.memory_space<vmem>>) attributes {dimension_semantics = [#tpu.dimension_semantics<parallel>, #tpu.dimension_semantics<parallel>, #tpu.dimension_semantics<arbitrary>], iteration_bounds = array<i64: 1, 1, 1>, scalar_prefetch = 0 : i64, scratch_operands = 1 : i64, tpu.core_type = #tpu.core_type<tc>, window_params = [{transform_indices = @transform_0, window_bounds = array<i64: 16, 32>}, {transform_indices = @transform_1, window_bounds = array<i64: 32, 32>}, {transform_indices = @transform_2, window_bounds = array<i64: 1, 32>}, {transform_indices = @transform_3, window_bounds = array<i64: 16, 32>}]} {
    %c0_i32 = arith.constant 0 : i32
    %0 = arith.cmpi eq, %arg2, %c0_i32 : i32
    %1 = arith.extui %0 : i1 to i32
    %c0_i32_0 = arith.constant 0 : i32
    %2 = arith.cmpi ne, %1, %c0_i32_0 : i32
    scf.if %2 {
      %cst_10 = arith.constant 0.000000e+00 : f32
      %12 = vector.broadcast %cst_10 : f32 to vector<16x32xf32>
      %c0_11 = arith.constant 0 : index
      %c0_12 = arith.constant 0 : index
      %13 = vector.load %arg7[%c0_11, %c0_12] : memref<16x32xf32, #tpu.memory_space<vmem>>, vector<16x32xf32>
      tpu.vector_store %arg7[%c0_11, %c0_12], %12 {strides = array<i32>} : memref<16x32xf32, #tpu.memory_space<vmem>>, vector<16x32xf32>,
    } else {
    }
    %c0 = arith.constant 0 : index
    %c0_1 = arith.constant 0 : index
    %3 = vector.load %arg7[%c0, %c0_1] : memref<16x32xf32, #tpu.memory_space<vmem>>, vector<16x32xf32>
    %c0_2 = arith.constant 0 : index
    %c0_3 = arith.constant 0 : index
    %4 = vector.load %arg3[%c0_2, %c0_3] : memref<16x32xbf16, #tpu.memory_space<vmem>>, vector<16x32xbf16>
    %c0_4 = arith.constant 0 : index
    %c0_5 = arith.constant 0 : index
    %5 = vector.load %arg4[%c0_4, %c0_5] : memref<32x32xbf16, #tpu.memory_space<vmem>>, vector<32x32xbf16>
    %cst = arith.constant dense<0.000000e+00> : vector<16x32xf32>
    %6 = tpu.matmul %4, %5, %cst {dimension_numbers = #tpu.dot_dimension_numbers<[1], [1], [0], [0], [0, 0, 1, 0], [], []>} : vector<16x32xbf16>, vector<32x32xbf16>, vector<16x32xf32> -> vector<16x32xf32>
    %7 = arith.addf %3, %6 : vector<16x32xf32>
    %c0_6 = arith.constant 0 : index
    %c0_7 = arith.constant 0 : index
    %8 = vector.load %arg7[%c0_6, %c0_7] : memref<16x32xf32, #tpu.memory_space<vmem>>, vector<16x32xf32>
    tpu.vector_store %arg7[%c0_6, %c0_7], %7 {strides = array<i32>} : memref<16x32xf32, #tpu.memory_space<vmem>>, vector<16x32xf32>,
    %c0_i32_8 = arith.constant 0 : i32
    %9 = arith.cmpi eq, %arg2, %c0_i32_8 : i32
    %10 = arith.extui %9 : i1 to i32
    %c0_i32_9 = arith.constant 0 : i32
    %11 = arith.cmpi ne, %10, %c0_i32_9 : i32
    scf.if %11 {
      %c0_10 = arith.constant 0 : index
      %c0_11 = arith.constant 0 : index
      %12 = vector.load %arg7[%c0_10, %c0_11] : memref<16x32xf32, #tpu.memory_space<vmem>>, vector<16x32xf32>
      %c0_12 = arith.constant 0 : index
      %c0_13 = arith.constant 0 : index
      %13 = vector.load %arg5[%c0_12, %c0_13] : memref<1x32xf32, #tpu.memory_space<vmem>>, vector<1x32xf32>
      %14 = vector.broadcast %13 : vector<1x32xf32> to vector<16x32xf32>
      %15 = arith.addf %12, %14 : vector<16x32xf32>
      %16 = arith.truncf %15 : vector<16x32xf32> to vector<16x32xbf16>
      %c0_14 = arith.constant 0 : index
      %c0_15 = arith.constant 0 : index
      %17 = vector.load %arg6[%c0_14, %c0_15] : memref<16x32xbf16, #tpu.memory_space<vmem>>, vector<16x32xbf16>
      tpu.vector_store %arg6[%c0_14, %c0_15], %16 {strides = array<i32>} : memref<16x32xbf16, #tpu.memory_space<vmem>>, vector<16x32xbf16>,
    } else {
    }
    return
  }
  func.func @transform_0(%arg0: i32, %arg1: i32, %arg2: i32) -> (i32, i32) {
    %c0_i32 = arith.constant 0 : i32
    return %arg0, %arg2 : i32, i32
  }
  func.func @transform_1(%arg0: i32, %arg1: i32, %arg2: i32) -> (i32, i32) {
    %c0_i32 = arith.constant 0 : i32
    return %arg1, %arg2 : i32, i32
  }
  func.func @transform_2(%arg0: i32, %arg1: i32, %arg2: i32) -> (i32, i32) {
    %c0_i32 = arith.constant 0 : i32
    %c0_i32_0 = arith.constant 0 : i32
    return %c0_i32, %arg1 : i32, i32
  }
  func.func @transform_3(%arg0: i32, %arg1: i32, %arg2: i32) -> (i32, i32) {
    %c0_i32 = arith.constant 0 : i32
    return %arg0, %arg1 : i32, i32
  }
}

</mosaic_0001>

<bundles_post_ra>
// kernel: tpu_custom_call.1
= control target key start
LH: loop header
LB: loop body
LE: loop exit
PB: predicated region body
PF: predicated region fallthrough
CT: control target
= control target key end

     0   :  { %8 = vsyncpa [#allocation4], 0  ;;  %s356_s0 = inlined_call_operand.hbm [shape: bf16[16,32], index: 0, kind: input, shape index: {}]   ;;  %s357_s1 = inlined_call_operand.hbm [shape: bf16[32,32], index: 1, kind: input, shape index: {}]   ;;  %s358_s2 = inlined_call_operand.vmem [shape: f32[1,32], index: 2, kind: input, shape index: {}]   ;;  %s359_s3 = inlined_call_operand.hbm [shape: bf16[16,32], index: 3, kind: output, shape index: {}]  }
   0x1   :  { %9 = vsyncpa [#allocation7], 0 }
   0x2   :  { %10 = vsyncpa [#allocation5], 0  ;;  %s274_s12 = smov [#allocation3]   ;;  %s202_s16 = scalar_lea.hbm %s356_s0, 128 }
   0x3   :  { %s16_s13 = sshll.u32 %s274_s12, 4  ;;  %p203_p0 = scmp.ne.s32.totalorder %s356_s0, %s202_s16  ;;  %s17_s13 = int_to_ptr.vmem [resolvable:$true] %s16_s13 }
   0x4   :  { %p206_p1 = scmp.lt.u32.totalorder %s202_s16, %s356_s0 }
   0x6   :  { %p208_p2 = pnand %p206_p1, %p203_p0 }
   0x8   :  { %211 = shalt.err (!%p208_p2)
}
   0x9   :  { %s212_s21 = scalar_lea.vmem %s17_s13, 128  ;;  %p217_p4 = scmp.lt.s32.totalorder %s17_s13, %s17_s13 }
   0xa   :  { %p213_p3 = scmp.ne.s32.totalorder %s17_s13, %s212_s21  ;;  %p218_p5 = scmp.lt.s32.totalorder %s212_s21, %s212_s21 }
   0xc   :  { %p219_p6 = por %p218_p5, %p217_p4 }
   0xe   :  { %p220_p7 = pnand %p219_p6, %p213_p3 }
  0x10   :  { %223 = shalt.err (!%p220_p7)
}
  0x11   :  { %s275_s22 = smov 64   ;;  %s276_s23 = smov 4  }
  0x12   :  { %22 = dma.hbm_to_vmem [thread:$0]  %s356_s0, 128, %s17_s13, [#allocation4], %s275_s22, %s275_s22, %s276_s23  }
  0x13   :  { %s277_s26 = smov [#allocation6]   ;;  %s224_s30 = scalar_lea.hbm %s357_s1, 256 }
  0x14   :  { %s28_s27 = sshll.u32 %s277_s26, 4  ;;  %p225_p8 = scmp.ne.s32.totalorder %s357_s1, %s224_s30  ;;  %s29_s27 = int_to_ptr.vmem [resolvable:$true] %s28_s27 }
  0x15   :  { %p228_p9 = scmp.lt.u32.totalorder %s224_s30, %s357_s1 }
  0x17   :  { %p230_p10 = pnand %p228_p9, %p225_p8 }
  0x19   :  { %233 = shalt.err (!%p230_p10)
}
  0x1a   :  { %s234_s8 = scalar_lea.vmem %s29_s27, 256  ;;  %p239_p12 = scmp.lt.s32.totalorder %s29_s27, %s29_s27 }
  0x1b   :  { %p235_p11 = scmp.ne.s32.totalorder %s29_s27, %s234_s8  ;;  %p240_p13 = scmp.lt.s32.totalorder %s234_s8, %s234_s8 }
  0x1d   :  { %p241_p0 = por %p240_p13, %p239_p12 }
  0x1f   :  { %p242_p1 = pnand %p241_p0, %p235_p11 }
  0x21   :  { %245 = shalt.err (!%p242_p1)
}
  0x22   :  { %34 = dma.hbm_to_vmem [thread:$0]  %s357_s1, 256, %s29_s27, [#allocation7], %s275_s22, %s275_s22, %s276_s23  }
  0x23   :  { %268 = dma.done.wait [#allocation4], 128  }
  0x24   :  { %269 = vsyncadd [#allocation4], 4294967168 }
  0x25   :  { %270 = dma.done.wait [#allocation7], 256  }
  0x26   :  { %271 = vsyncadd [#allocation7], 4294967040  ;;  %vm48_vm0 = vcmask 261120   ;;  %v278_v0 = vmov 0.0   ;;  %vm279_vm1 = vmmov 0   ;;  %v199_v1 = vld [vmem:[#allocation6] sm:$0xff]  }
  0x27   :  { %49 = vst.msk [vmem:[#allocation2] sm:$0xff] %vm48_vm0, %v278_v0  ;;  %50 = vst.msk [vmem:[#allocation2 + $0x8] sm:$0xff] %vm48_vm0, %v278_v0  ;;  %184 = vmatprep.subr.bf16.mxu0 %v278_v0  ;;  %188 = vmatprep.mubr.msk.bf16.mxu0 %vm279_vm1, %v278_v0  ;;  %v79_v2 = vsel %vm48_vm0, %v199_v1, 0  ;;  %v200_v3 = vld [vmem:[#allocation6 + $0x8] sm:$0xff]   ;;  %v201_v5 = vld [vmem:[#allocation3] sm:$0xff]   ;;  %vm151_vm2 = vcmask 257024  }
  0x28   :  { %185 = vmatpush3.bf16.xpose.msra.mxu0 %v79_v2  ;;  %v82_v4 = vsel %vm48_vm0, %v200_v3, 0  ;;  %v176_v14 = vld [vmem:[%s358_s2] ss:$0 sm:$0xff]  ;;  %s280_s11 = smov [#allocation8]  }
  0x29   :  { %186 = vmatprep.subr.bf16.mxu0 %v278_v0  ;;  %s159_s12 = sshll.u32 %s280_s11, 4  ;;  %s160_s12 = int_to_ptr.vmem [resolvable:$true] %s159_s12 }
  0x2a   :  { %s246_s13 = scalar_lea.vmem %s160_s12, 128  ;;  %p251_p3 = scmp.lt.s32.totalorder %s160_s12, %s160_s12 }
  0x2b   :  { %p247_p2 = scmp.ne.s32.totalorder %s160_s12, %s246_s13  ;;  %p252_p4 = scmp.lt.s32.totalorder %s246_s13, %s246_s13 }
  0x2d   :  { %p253_p5 = por %p252_p4, %p251_p3 }
  0x2e   :  { %v51_v6 = vld [vmem:[#allocation2] sm:$0xff]  ;;  %v52_v8 = vld [vmem:[#allocation2 + $0x8] sm:$0xff] }
  0x2f   :  { %p254_p6 = pnand %p253_p5, %p247_p2 }
  0x30   :  { %187 = vmatpush3.bf16.xpose.msra.mxu0 %v82_v4 }
  0x37   :  { %189 = vmatmul.mubr.msk.bf16.vlgmr.msra.gmra.mrb[0].mxu0 %vm48_vm0, %v201_v5 }
 0x10a   :  { %v118_v7 = vpop.f32.mrb[0].mxu0 }
 0x10b   :  { %v125_v9 = vadd.f32 %v118_v7, %v51_v6  ;;  %v190_v10 = vpop.f32.mrb[1].mxu0 }
 0x10c   :  { %v121_v11 = vpop.f32.mrb[2].mxu0 }
 0x10d   :  { %127 = vst.msk [vmem:[#allocation2] sm:$0xff] %vm48_vm0, %v125_v9  ;;  %v126_v12 = vadd.f32 %v121_v11, %v52_v8  ;;  %v191_v13 = vpop.f32.mrb[3].mxu0 }
 0x10f   :  { %128 = vst.msk [vmem:[#allocation2 + $0x8] sm:$0xff] %vm48_vm0, %v126_v12 }
 0x114   :  { %v132_v15 = vld [vmem:[#allocation2] sm:$0xff] }
 0x115   :  { %v141_v16 = vadd.f32 %v176_v14, %v132_v15 }
 0x116   :  { %v133_v17 = vld [vmem:[#allocation2 + $0x8] sm:$0xff] }
 0x117   :  { %v142_v18 = vadd.f32 %v176_v14, %v133_v17  ;;  %v179_v19 = vpack.c.bf16 %v141_v16, %v141_v16 }
 0x119   :  { %v180_v20 = vpack.c.bf16 %v142_v18, %v142_v18  ;;  %152 = vst.msk [vmem:[#allocation8] sm:$0xf] %vm151_vm2, %v179_v19 }
 0x11b   :  { %153 = vst.msk [vmem:[#allocation8 + $0x4] sm:$0xf] %vm151_vm2, %v180_v20 }
 0x11c   :  { %257 = shalt.err (!%p254_p6)
}
 0x11d   :  { %s258_s15 = scalar_lea.hbm %s359_s3, 128 }
 0x11e   :  { %p259_p7 = scmp.ne.s32.totalorder %s359_s3, %s258_s15  ;;  %p262_p8 = scmp.lt.u32.totalorder %s258_s15, %s359_s3 }
 0x120   :  { %p264_p9 = pnand %p262_p8, %p259_p7 }
 0x122   :  { %267 = shalt.err (!%p264_p9)
}
 0x123   :  { %165 = dma.vmem_to_hbm [thread:$0]  %s160_s12, 128, %s359_s3, [#allocation5], %s275_s22, %s275_s22, %s276_s23  }
 0x124   :  { %272 = dma.done.wait [#allocation5], 128  }
 0x125   :  { %273 = vsyncadd [#allocation5], 4294967168 }
 0x126   :  { %169 = vsyncpa [#allocation4], 1 }
 0x127   :  { %170 = vsyncpa [#allocation7], 1 }
 0x128   :  { %171 = vsyncpa [#allocation5], 1 }

</bundles_post_ra>
